<compile_context>
chip_gen: v6e
topology: v6e:2x2x1
jax: 0.10.0
libtpu: 0.0.40
codegen_flags: <defaults>
</compile_context>

<pallas_src>
import jax
import jax.numpy as jnp
from jax.experimental import pallas as pl
from jax.experimental.pallas import tpu as pltpu


def _contrastive_loss_kernel(m_ref, ew_ref, label_ref, out_ref):
    # m_ref:     (1,)           f32 in SMEM (scalar threshold)
    # ew_ref:    (tile_r, lanes) native dtype in VMEM
    # label_ref: (tile_r, lanes) native dtype in VMEM
    # out_ref:   (8, lanes)      f32 in VMEM (per-tile partial sums)
    ew = ew_ref[...].astype(jnp.float32)
    label = label_ref[...].astype(jnp.float32)
    m = m_ref[0]

    d = 1.0 - ew
    l_1 = 0.25 * d * d
    clipped = jnp.where(ew < m, 0.0, ew)
    l_0 = clipped * clipped
    # label*l_1 + (1 - label)*l_0  ==  l_0 + label*(l_1 - l_0)  (one less mul)
    loss = l_0 + label * (l_1 - l_0)

    tr, tl = loss.shape
    # Reduce only across sublane-groups (elementwise vreg adds on the VPU,
    # fully hidden under the DMA).  The single expensive cross-lane reduction
    # happens once, outside the kernel, on the tiny partials array.
    out_ref[...] = loss.reshape(tr // 8, 8, tl).sum(axis=0)


def contrastive_loss(ew: jax.Array, label: jax.Array, m,
                     *, tile_rows: int = 512, tile_lanes: int = 1024) -> jax.Array:
    """Scalar loss matching ContrastiveLoss.forward(ew, label, m)."""
    assert ew.shape == label.shape
    total = ew.size

    ew_f = ew.reshape(-1)
    lb_f = label.reshape(-1)
    # Keep native floating dtypes (cast per-tile in-kernel); only promote
    # non-float inputs (e.g. bool/int labels) once here.
    if not jnp.issubdtype(ew_f.dtype, jnp.floating):
        ew_f = ew_f.astype(jnp.float32)
    if not jnp.issubdtype(lb_f.dtype, jnp.floating):
        lb_f = lb_f.astype(jnp.float32)

    # Pick a lane-dense tile but avoid large padding for tiny inputs.
    lanes = tile_lanes
    while lanes > 128 and total <= (lanes // 2) * 8:
        lanes //= 2
    n_rows = pl.cdiv(total, lanes)
    tile_r = min(tile_rows, max(8, pl.cdiv(n_rows, 8) * 8))
    n_tiles = pl.cdiv(n_rows, tile_r)
    padded_rows = n_tiles * tile_r
    pad = padded_rows * lanes - total

    # Zero padding is exact for any m: ew=0 -> l_0 = 0, label=0 -> label*l_1 = 0.
    if pad:
        ew_f = jnp.pad(ew_f, (0, pad))
        lb_f = jnp.pad(lb_f, (0, pad))
    ew2 = ew_f.reshape(padded_rows, lanes)
    lb2 = lb_f.reshape(padded_rows, lanes)

    m_arr = jnp.full((1,), m, dtype=jnp.float32)

    partials = pl.pallas_call(
        _contrastive_loss_kernel,
        out_shape=jax.ShapeDtypeStruct((n_tiles * 8, lanes), jnp.float32),
        grid=(n_tiles,),
        in_specs=[
            pl.BlockSpec(memory_space=pltpu.MemorySpace.SMEM),   # m (scalar)
            pl.BlockSpec((tile_r, lanes), lambda i: (i, 0)),     # ew
            pl.BlockSpec((tile_r, lanes), lambda i: (i, 0)),     # label
        ],
        out_specs=pl.BlockSpec((8, lanes), lambda i: (i, 0)),
        compiler_params=pltpu.CompilerParams(
            dimension_semantics=("parallel",)),
    )(m_arr, ew2, lb2)

    # Final reduction over the small partials slab (>= 64x smaller than input).
    return jnp.sum(partials)


def _reference(ew, label, m):
    ew = ew.astype(jnp.float32)
    label = label.astype(jnp.float32)
    l_1 = 0.25 * (1.0 - ew) * (1.0 - ew)
    clipped = jnp.where(ew < m, jnp.zeros_like(ew), ew)
    l_0 = clipped * clipped
    return jnp.sum(label * l_1 + (1.0 - label) * l_0)


if __name__ == "__main__":
    key = jax.random.PRNGKey(0)
    k1, k2, k3, k4, k5, k6 = jax.random.split(key, 6)

    # Case 1: small, lane-aligned, f32 (single tile).
    ew1 = jax.random.uniform(k1, (8, 128), jnp.float32, minval=-1.0, maxval=1.0)
    lb1 = jax.random.bernoulli(k2, 0.5, (8, 128)).astype(jnp.float32)
    out1 = contrastive_loss(ew1, lb1, 0.5)
    jax.block_until_ready(out1)
    ref1 = _reference(ew1, lb1, 0.5)
    assert jnp.allclose(out1, ref1, rtol=1e-5, atol=1e-4), (out1, ref1)

    # Case 2: non-aligned shape (exercises zero-padding path) + negative m.
    ew2 = jax.random.uniform(k3, (5, 200), jnp.float32, minval=-1.0, maxval=1.0)
    lb2 = jax.random.bernoulli(k4, 0.5, (5, 200)).astype(jnp.float32)
    out2 = contrastive_loss(ew2, lb2, -0.25)
    jax.block_until_ready(out2)
    ref2 = _reference(ew2, lb2, -0.25)
    assert jnp.allclose(out2, ref2, rtol=1e-5, atol=1e-4), (out2, ref2)

    # Case 3: bf16 inputs, multi-tile grid (tile_rows=64 -> 4 grid steps).
    ew3 = jax.random.uniform(k5, (256, 1024), jnp.float32,
                             minval=-1.0, maxval=1.0).astype(jnp.bfloat16)
    lb3 = jax.random.bernoulli(k6, 0.5, (256, 1024)).astype(jnp.bfloat16)
    out3 = contrastive_loss(ew3, lb3, 0.3, tile_rows=64)
    jax.block_until_ready(out3)
    ref3 = _reference(ew3, lb3, 0.3)
    assert jnp.allclose(out3, ref3, rtol=1e-4, atol=1e-2), (out3, ref3)

    print("KERNEL_OK")
</pallas_src>

<mosaic_0001>
module attributes {stable_mosaic.version = 11 : i64} {
  func.func @_contrastive_loss_kernel(%arg0: i32, %arg1: memref<1xf32, #tpu.memory_space<smem>>, %arg2: memref<8x128xf32, #tpu.memory_space<vmem>>, %arg3: memref<8x128xf32, #tpu.memory_space<vmem>>, %arg4: memref<8x128xf32, #tpu.memory_space<vmem>>) attributes {dimension_semantics = [#tpu.dimension_semantics<parallel>], iteration_bounds = array<i64: 1>, scalar_prefetch = 0 : i64, scratch_operands = 0 : i64, tpu.core_type = #tpu.core_type<tc>, window_params = [{transform_indices = @transform_0, window_bounds = array<i64: 1>}, {transform_indices = @transform_1, window_bounds = array<i64: 8, 128>}, {transform_indices = @transform_2, window_bounds = array<i64: 8, 128>}, {transform_indices = @transform_3, window_bounds = array<i64: 8, 128>}]} {
    %c0 = arith.constant 0 : index
    %c0_0 = arith.constant 0 : index
    %0 = vector.load %arg2[%c0, %c0_0] : memref<8x128xf32, #tpu.memory_space<vmem>>, vector<8x128xf32>
    %c0_1 = arith.constant 0 : index
    %c0_2 = arith.constant 0 : index
    %1 = vector.load %arg3[%c0_1, %c0_2] : memref<8x128xf32, #tpu.memory_space<vmem>>, vector<8x128xf32>
    %c0_3 = arith.constant 0 : index
    %2 = memref.load %arg1[%c0_3] : memref<1xf32, #tpu.memory_space<smem>>
    %cst = arith.constant 1.000000e+00 : f32
    %3 = vector.broadcast %cst : f32 to vector<8x128xf32>
    %4 = arith.subf %3, %0 : vector<8x128xf32>
    %cst_4 = arith.constant 2.500000e-01 : f32
    %5 = vector.broadcast %cst_4 : f32 to vector<8x128xf32>
    %6 = arith.mulf %5, %4 : vector<8x128xf32>
    %7 = arith.mulf %6, %4 : vector<8x128xf32>
    %8 = vector.broadcast %2 : f32 to vector<8x128xf32>
    %9 = arith.cmpf olt, %0, %8 : vector<8x128xf32>
    %cst_5 = arith.constant 0.000000e+00 : f32
    %10 = vector.broadcast %cst_5 : f32 to vector<8x128xf32>
    %11 = arith.select %9, %10, %0 : vector<8x128xi1>, vector<8x128xf32>
    %12 = arith.mulf %11, %11 : vector<8x128xf32>
    %13 = arith.subf %7, %12 : vector<8x128xf32>
    %14 = arith.mulf %1, %13 : vector<8x128xf32>
    %15 = arith.addf %12, %14 : vector<8x128xf32>
    %16 = vector.shape_cast %15 : vector<8x128xf32> to vector<1x8x128xf32>
    %cst_6 = arith.constant dense<0.000000e+00> : vector<8x128xf32>
    %17 = vector.multi_reduction <add>, %16, %cst_6 [0] : vector<1x8x128xf32> to vector<8x128xf32>
    %c0_7 = arith.constant 0 : index
    %c0_8 = arith.constant 0 : index
    %18 = vector.load %arg4[%c0_7, %c0_8] : memref<8x128xf32, #tpu.memory_space<vmem>>, vector<8x128xf32>
    tpu.vector_store %arg4[%c0_7, %c0_8], %17 {strides = array<i32>} : memref<8x128xf32, #tpu.memory_space<vmem>>, vector<8x128xf32>,
    return
  }
  func.func @transform_0(%arg0: i32) -> i32 {
    %c0_i32 = arith.constant 0 : i32
    %c0_i32_0 = arith.constant 0 : i32
    return %c0_i32 : i32
  }
  func.func @transform_1(%arg0: i32) -> (i32, i32) {
    %c0_i32 = arith.constant 0 : i32
    %c0_i32_0 = arith.constant 0 : i32
    return %arg0, %c0_i32 : i32, i32
  }
  func.func @transform_2(%arg0: i32) -> (i32, i32) {
    %c0_i32 = arith.constant 0 : i32
    %c0_i32_0 = arith.constant 0 : i32
    return %arg0, %c0_i32 : i32, i32
  }
  func.func @transform_3(%arg0: i32) -> (i32, i32) {
    %c0_i32 = arith.constant 0 : i32
    %c0_i32_0 = arith.constant 0 : i32
    return %arg0, %c0_i32 : i32, i32
  }
}

</mosaic_0001>

<bundles_post_ra>
// kernel: tpu_custom_call.1
= control target key start
LH: loop header
LB: loop body
LE: loop exit
PB: predicated region body
PF: predicated region fallthrough
CT: control target
= control target key end

     0   :  { %9 = vsyncpa [#allocation4], 0  ;;  %s175_s0 = inlined_call_operand.<no memory space> [shape: f32[1], index: 0, kind: input, shape index: {}]   ;;  %s176_s1 = inlined_call_operand.hbm [shape: f32[8,128], index: 1, kind: input, shape index: {}]   ;;  %s177_s2 = inlined_call_operand.hbm [shape: f32[8,128], index: 2, kind: input, shape index: {}]   ;;  %s178_s3 = inlined_call_operand.hbm [shape: f32[8,128], index: 3, kind: output, shape index: {}]  }
   0x1   :  { %10 = vsyncpa [#allocation7], 0 }
   0x2   :  { %11 = vsyncpa [#allocation5], 0  ;;  %s140_s12 = smov [#allocation3]   ;;  %s141_s14 = smov [#allocation6]  }
   0x3   :  { %s20_s13 = sshll.u32 %s140_s12, 4  ;;  %s30_s15 = sshll.u32 %s141_s14, 4  ;;  %s21_s13 = int_to_ptr.vmem [resolvable:$true] %s20_s13  ;;  %s31_s15 = int_to_ptr.vmem [resolvable:$true] %s30_s15 }
   0x4   :  { %s82_s16 = scalar_lea.vmem %s21_s13, 128  ;;  %p87_p1 = scmp.lt.s32.totalorder %s21_s13, %s21_s13 }
   0x5   :  { %p83_p0 = scmp.ne.s32.totalorder %s21_s13, %s82_s16  ;;  %p88_p2 = scmp.lt.s32.totalorder %s82_s16, %s82_s16 }
   0x7   :  { %p89_p3 = por %p88_p2, %p87_p1 }
   0x9   :  { %p90_p4 = pnand %p89_p3, %p83_p0 }
   0xb   :  { %93 = shalt.err (!%p90_p4)
}
   0xc   :  { %23 = dma.hbm_to_vmem [thread:$0]  %s176_s1, 128, %s21_s13, [#allocation4]  }
   0xd   :  { %s102_s19 = scalar_lea.vmem %s31_s15, 128  ;;  %p107_p6 = scmp.lt.s32.totalorder %s31_s15, %s31_s15 }
   0xe   :  { %p103_p5 = scmp.ne.s32.totalorder %s31_s15, %s102_s19  ;;  %p108_p7 = scmp.lt.s32.totalorder %s102_s19, %s102_s19 }
  0x10   :  { %p109_p8 = por %p108_p7, %p107_p6 }
  0x12   :  { %p110_p9 = pnand %p109_p8, %p103_p5 }
  0x14   :  { %113 = shalt.err (!%p110_p9)
}
  0x15   :  { %33 = dma.hbm_to_vmem [thread:$0]  %s177_s2, 128, %s31_s15, [#allocation7]  }
  0x16   :  { %134 = dma.done.wait [#allocation4], 128  }
  0x17   :  { %135 = vsyncadd [#allocation4], 4294967168 }
  0x18   :  { %136 = dma.done.wait [#allocation7], 128  }
  0x19   :  { %137 = vsyncadd [#allocation7], 4294967168  ;;  %v46_v0 = vstv %s175_s0  ;;  %v40_v1 = vld [vmem:[#allocation3] sm:$0xff]  ;;  %v41_v7 = vld [vmem:[#allocation6] sm:$0xff]  ;;  %s142_s1 = smov [#allocation8]  }
  0x1a   :  { %v43_v2 = vsub.f32 1.0, %v40_v1  ;;  %vm47_vm0 = vcmp.lt.f32.partialorder %v40_v1, %v46_v0  ;;  %s61_s24 = sshll.u32 %s142_s1, 4  ;;  %s62_s24 = int_to_ptr.vmem [resolvable:$true] %s61_s24 }
  0x1b   :  { %v48_v3 = vsel %vm47_vm0, 0.0, %v40_v1  ;;  %s114_s2 = scalar_lea.vmem %s62_s24, 128  ;;  %p119_p11 = scmp.lt.s32.totalorder %s62_s24, %s62_s24 }
  0x1c   :  { %v44_v4 = vmul.f32 0.25, %v43_v2  ;;  %v49_v5 = vmul.f32 %v48_v3, %v48_v3  ;;  %p115_p10 = scmp.ne.s32.totalorder %s62_s24, %s114_s2  ;;  %p120_p12 = scmp.lt.s32.totalorder %s114_s2, %s114_s2 }
  0x1e   :  { %v45_v6 = vmul.f32 %v44_v4, %v43_v2  ;;  %p121_p13 = por %p120_p12, %p119_p11 }
  0x20   :  { %v50_v8 = vsub.f32 %v45_v6, %v49_v5  ;;  %p122_p0 = pnand %p121_p13, %p115_p10 }
  0x22   :  { %v51_v9 = vmul.f32 %v50_v8, %v41_v7 }
  0x24   :  { %v52_v10 = vadd.f32 %v51_v9, %v49_v5 }
  0x26   :  { %54 = vst [vmem:[#allocation8] sm:$0xff] %v52_v10 }
  0x27   :  { %125 = shalt.err (!%p122_p0)
}
  0x28   :  { %64 = dma.vmem_to_hbm [thread:$0]  %s62_s24, 128, %s178_s3, [#allocation5]  }
  0x29   :  { %138 = dma.done.wait [#allocation5], 128  }
  0x2a   :  { %139 = vsyncadd [#allocation5], 4294967168 }
  0x2b   :  { %68 = vsyncpa [#allocation4], 1 }
  0x2c   :  { %69 = vsyncpa [#allocation7], 1 }
  0x2d   :  { %70 = vsyncpa [#allocation5], 1 }

</bundles_post_ra>
